<compile_context>
chip_gen: v5e
topology: v5e:2x2
jax: 0.10.0
libtpu: 0.0.40
codegen_flags: <defaults>
</compile_context>

<pallas_src>
import functools
import math

import jax
import jax.numpy as jnp
from jax.experimental import pallas as pl
from jax.experimental.pallas import tpu as pltpu


def _mhsa_kernel(z_seq_ref, z_tile_ref, wq_ref, wk_ref, wv_ref, wo_ref, bo_ref,
                 o_ref, k_sc, v_sc, acc_sc, *, heads: int, n_valid: int,
                 n_pad: int, exp_dtype):
    """Grid = (batch, query_tile).

    z_seq_ref : (1, N_pad, D) bf16  full (padded) sequence for this batch elem
                                    (constant over the query-tile axis -> resident)
    z_tile_ref: (1, TQ, D)   bf16  query-tile rows of z (streamed per tile)
    wq_ref    : (H, D, hd)   bf16  per-head Q weights, 1/sqrt(hd) pre-folded
    wk_ref    : (H, D, hd)   bf16  per-head K weights
    wv_ref    : (H, D, hd)   bf16  per-head V weights
    wo_ref    : (H, hd, D)   bf16  per-head output-projection weights
    bo_ref    : (1, D)       f32   output-projection bias
    o_ref     : (1, TQ, D)         output tile
    k_sc/v_sc : (H, N_pad, hd) bf16 VMEM scratch (filled once per batch elem)
    acc_sc    : (TQ, D)      f32   per-tile output accumulator
    """
    qi = pl.program_id(1)
    TQ = o_ref.shape[1]

    acc_sc[...] = jnp.zeros_like(acc_sc)

    # Key-padding mask only materialized when the sequence was padded.
    if n_valid != n_pad:
        key_valid = jax.lax.broadcasted_iota(jnp.int32, (TQ, n_pad), 1) < n_valid
    else:
        key_valid = None

    z_tile = z_tile_ref[0]                                   # (TQ, D) bf16

    @pl.loop(0, heads)
    def _per_head(h):
        # ---- once per batch element: project this head's K/V (K = D matmuls)
        @pl.when(qi == 0)
        def _project_kv():
            zf = z_seq_ref[0]                                # (N_pad, D) bf16
            k_sc[h] = jnp.dot(zf, wk_ref[h],
                              preferred_element_type=jnp.float32
                              ).astype(jnp.bfloat16)
            v_sc[h] = jnp.dot(zf, wv_ref[h],
                              preferred_element_type=jnp.float32
                              ).astype(jnp.bfloat16)

        # ---- Q projection for this tile/head (scale folded into the weight)
        q = jnp.dot(z_tile, wq_ref[h],
                    preferred_element_type=jnp.float32).astype(jnp.bfloat16)
        k = k_sc[h]                                          # (N_pad, hd) bf16
        v = v_sc[h]                                          # (N_pad, hd) bf16

        # ---- scores (contract last dims of both -> no explicit transpose)
        s = jax.lax.dot_general(q, k, (((1,), (1,)), ((), ())),
                                preferred_element_type=jnp.float32)  # (TQ, N_pad)
        if key_valid is not None:
            s = jnp.where(key_valid, s, jnp.float32(-1e30))
        m = jnp.max(s, axis=-1, keepdims=True)
        e = jnp.exp((s - m).astype(exp_dtype))               # bf16 on v6e/v7x
        denom = jnp.sum(e, axis=-1, keepdims=True, dtype=jnp.float32)

        # ---- deferred normalization: un-normalized exp -> PV matmul,
        #      then scale the small (TQ, hd) result.
        pv = jnp.dot(e.astype(jnp.bfloat16), v,
                     preferred_element_type=jnp.float32)     # (TQ, hd) f32
        ho = (pv * pl.reciprocal(denom, approx=True)).astype(jnp.bfloat16)
        # (attention dropout is identity in eval mode)

        # ---- output projection contribution for this head
        acc_sc[...] += jnp.dot(ho, wo_ref[h],
                               preferred_element_type=jnp.float32)  # (TQ, D)

    o_ref[0] = (acc_sc[...] + bo_ref[...]).astype(o_ref.dtype)


def _exp_dtype_for_backend():
    """bf16 exp on v6e/v7x (bf16 EUP); f32 on older generations (v5e etc.)."""
    try:
        kind = jax.devices()[0].device_kind.lower()
    except Exception:
        return jnp.float32
    if ("v6" in kind) or ("v7" in kind) or ("7x" in kind):
        return jnp.bfloat16
    return jnp.float32


def multi_head_self_attention(z, wq, wk, wv, wo, bo, *, heads: int,
                              q_tile: int = 128):
    """z: (B, N, D); wq/wk/wv/wo: (D, D) PyTorch-style (out, in); bo: (D,)."""
    B, N, D = z.shape
    hd = D // heads
    assert heads * hd == D, "emb_dim must be divisible by heads"

    # PyTorch Linear: y = x @ W.T.  Per-head input-side weight: (heads, D, hd).
    def per_head_in(w):
        return jnp.transpose(w.T.reshape(D, heads, hd), (1, 0, 2))

    inv_scale = 1.0 / math.sqrt(hd)
    wq_h = (per_head_in(wq) * inv_scale).astype(jnp.bfloat16)   # scale folded in
    wk_h = per_head_in(wk).astype(jnp.bfloat16)
    wv_h = per_head_in(wv).astype(jnp.bfloat16)
    wo_h = wo.T.reshape(heads, hd, D).astype(jnp.bfloat16)      # (heads, hd, D)
    bo_2d = bo.reshape(1, D).astype(jnp.float32)

    # Query-dimension tiling; pad N up to a multiple of the tile and mask keys.
    TQ = q_tile if N >= q_tile else N
    n_tiles = -(-N // TQ)          # cdiv
    N_pad = n_tiles * TQ

    z_bf = z.astype(jnp.bfloat16)                               # bf16 DMA stream
    if N_pad != N:
        z_bf = jnp.pad(z_bf, ((0, 0), (0, N_pad - N), (0, 0)))

    kernel = functools.partial(_mhsa_kernel, heads=heads, n_valid=N,
                               n_pad=N_pad, exp_dtype=_exp_dtype_for_backend())

    out = pl.pallas_call(
        kernel,
        out_shape=jax.ShapeDtypeStruct((B, N_pad, D), z.dtype),
        grid_spec=pltpu.PrefetchScalarGridSpec(
            num_scalar_prefetch=0,
            grid=(B, n_tiles),
            in_specs=[
                pl.BlockSpec((1, N_pad, D), lambda b, qi: (b, 0, 0)),    # z (full seq)
                pl.BlockSpec((1, TQ, D), lambda b, qi: (b, qi, 0)),      # z (q tile)
                pl.BlockSpec((heads, D, hd), lambda b, qi: (0, 0, 0)),   # Wq (scaled)
                pl.BlockSpec((heads, D, hd), lambda b, qi: (0, 0, 0)),   # Wk
                pl.BlockSpec((heads, D, hd), lambda b, qi: (0, 0, 0)),   # Wv
                pl.BlockSpec((heads, hd, D), lambda b, qi: (0, 0, 0)),   # Wo
                pl.BlockSpec((1, D), lambda b, qi: (0, 0)),              # bias
            ],
            out_specs=pl.BlockSpec((1, TQ, D), lambda b, qi: (b, qi, 0)),
            scratch_shapes=[
                pltpu.VMEM((heads, N_pad, hd), jnp.bfloat16),   # K scratch
                pltpu.VMEM((heads, N_pad, hd), jnp.bfloat16),   # V scratch
                pltpu.VMEM((TQ, D), jnp.float32),               # output accumulator
            ],
        ),
        compiler_params=pltpu.CompilerParams(
            dimension_semantics=("parallel", "arbitrary"),
            vmem_limit_bytes=48 * 1024 * 1024,   # < v7x's 64 MiB physical VMEM
        ),
    )(z_bf, z_bf, wq_h, wk_h, wv_h, wo_h, bo_2d)

    if N_pad != N:
        out = out[:, :N, :]
    return out


def _reference(z, wq, wk, wv, wo, bo, *, heads: int):
    """Pure-JAX (f32) reference mirroring the PyTorch forward (eval mode)."""
    B, N, D = z.shape
    hd = D // heads
    q = z @ wq.T
    k = z @ wk.T
    v = z @ wv.T
    q = q.reshape(B, N, heads, hd).transpose(0, 2, 1, 3)
    k = k.reshape(B, N, heads, hd).transpose(0, 2, 1, 3)
    v = v.reshape(B, N, heads, hd).transpose(0, 2, 1, 3)
    dots = jnp.einsum("bhqd,bhkd->bhqk", q, k) / (hd ** 0.5)
    attn = jax.nn.softmax(dots, axis=-1)
    out = jnp.einsum("bhqk,bhkd->bhqd", attn, v)
    out = out.transpose(0, 2, 1, 3).reshape(B, N, D)
    return out @ wo.T + bo


if __name__ == "__main__":
    # --- config 1: small shapes consistent with the module (B, num_patch, emb_dim)
    B, N, D, HEADS = 2, 8, 32, 4
    key = jax.random.PRNGKey(0)
    kz, kq, kk, kv, ko, kb, k2 = jax.random.split(key, 7)

    z = jax.random.normal(kz, (B, N, D), dtype=jnp.float32)
    wq = jax.random.normal(kq, (D, D), dtype=jnp.float32) * 0.1   # PyTorch (out, in)
    wk = jax.random.normal(kk, (D, D), dtype=jnp.float32) * 0.1
    wv = jax.random.normal(kv, (D, D), dtype=jnp.float32) * 0.1
    wo = jax.random.normal(ko, (D, D), dtype=jnp.float32) * 0.1
    bo = jax.random.normal(kb, (D,), dtype=jnp.float32) * 0.1

    out = multi_head_self_attention(z, wq, wk, wv, wo, bo, heads=HEADS)
    out = jax.block_until_ready(out)
    ref = _reference(z, wq, wk, wv, wo, bo, heads=HEADS)
    assert out.shape == (B, N, D)
    assert jnp.allclose(out, ref, atol=2e-2, rtol=2e-2), "mismatch vs reference"

    # --- config 2: N not divisible by the query tile -> exercises padding + key mask
    B2, N2, D2, H2 = 1, 10, 16, 2
    k2z, k2q, k2k, k2v, k2o, k2b = jax.random.split(k2, 6)
    z2 = jax.random.normal(k2z, (B2, N2, D2), dtype=jnp.float32)
    wq2 = jax.random.normal(k2q, (D2, D2), dtype=jnp.float32) * 0.1
    wk2 = jax.random.normal(k2k, (D2, D2), dtype=jnp.float32) * 0.1
    wv2 = jax.random.normal(k2v, (D2, D2), dtype=jnp.float32) * 0.1
    wo2 = jax.random.normal(k2o, (D2, D2), dtype=jnp.float32) * 0.1
    bo2 = jax.random.normal(k2b, (D2,), dtype=jnp.float32) * 0.1

    out2 = multi_head_self_attention(z2, wq2, wk2, wv2, wo2, bo2, heads=H2,
                                     q_tile=8)
    out2 = jax.block_until_ready(out2)
    ref2 = _reference(z2, wq2, wk2, wv2, wo2, bo2, heads=H2)
    assert out2.shape == (B2, N2, D2)
    assert jnp.allclose(out2, ref2, atol=2e-2, rtol=2e-2), "mismatch (masked path)"

    print("KERNEL_OK")
</pallas_src>

<mosaic_0001>
module attributes {stable_mosaic.version = 11 : i64} {
  func.func @_mhsa_kernel(%arg0: i32, %arg1: i32, %arg2: memref<1x8x32xbf16, #tpu.memory_space<vmem>>, %arg3: memref<1x8x32xbf16, #tpu.memory_space<vmem>>, %arg4: memref<4x32x8xbf16, #tpu.memory_space<vmem>>, %arg5: memref<4x32x8xbf16, #tpu.memory_space<vmem>>, %arg6: memref<4x32x8xbf16, #tpu.memory_space<vmem>>, %arg7: memref<4x8x32xbf16, #tpu.memory_space<vmem>>, %arg8: memref<1x32xf32, #tpu.memory_space<vmem>>, %arg9: memref<1x8x32xf32, #tpu.memory_space<vmem>>, %arg10: memref<4x8x8xbf16, #tpu.memory_space<vmem>>, %arg11: memref<4x8x8xbf16, #tpu.memory_space<vmem>>, %arg12: memref<8x32xf32, #tpu.memory_space<vmem>>) attributes {dimension_semantics = [#tpu.dimension_semantics<parallel>, #tpu.dimension_semantics<arbitrary>], iteration_bounds = array<i64: 2, 1>, scalar_prefetch = 0 : i64, scratch_operands = 3 : i64, tpu.core_type = #tpu.core_type<tc>, window_params = [{transform_indices = @transform_0, window_bounds = array<i64: 1, 8, 32>}, {transform_indices = @transform_1, window_bounds = array<i64: 1, 8, 32>}, {pipeline_mode = #tpu.pipeline_mode<synchronous>, transform_indices = @transform_2, window_bounds = array<i64: 4, 32, 8>}, {pipeline_mode = #tpu.pipeline_mode<synchronous>, transform_indices = @transform_3, window_bounds = array<i64: 4, 32, 8>}, {pipeline_mode = #tpu.pipeline_mode<synchronous>, transform_indices = @transform_4, window_bounds = array<i64: 4, 32, 8>}, {pipeline_mode = #tpu.pipeline_mode<synchronous>, transform_indices = @transform_5, window_bounds = array<i64: 4, 8, 32>}, {pipeline_mode = #tpu.pipeline_mode<synchronous>, transform_indices = @transform_6, window_bounds = array<i64: 1, 32>}, {transform_indices = @transform_7, window_bounds = array<i64: 1, 8, 32>}]} {
    %cst = arith.constant 0.000000e+00 : f32
    %0 = vector.broadcast %cst : f32 to vector<8x32xf32>
    %c0 = arith.constant 0 : index
    %c0_0 = arith.constant 0 : index
    %1 = vector.load %arg12[%c0, %c0_0] : memref<8x32xf32, #tpu.memory_space<vmem>>, vector<8x32xf32>
    tpu.vector_store %arg12[%c0, %c0_0], %0 {strides = array<i32>} : memref<8x32xf32, #tpu.memory_space<vmem>>, vector<8x32xf32>,
    %c0_1 = arith.constant 0 : index
    %c0_2 = arith.constant 0 : index
    %c0_3 = arith.constant 0 : index
    %2 = vector.load %arg3[%c0_1, %c0_2, %c0_3] : memref<1x8x32xbf16, #tpu.memory_space<vmem>>, vector<1x8x32xbf16>
    %3 = vector.shape_cast %2 : vector<1x8x32xbf16> to vector<8x32xbf16>
    %c0_i32 = arith.constant 0 : i32
    %c4_i32 = arith.constant 4 : i32
    %4 = arith.addi %c0_i32, %c4_i32 : i32
    %c1_i32 = arith.constant 1 : i32
    scf.for %arg13 = %c0_i32 to %4 step %c1_i32  : i32 {
      %c1_i32_12 = arith.constant 1 : i32
      %12 = arith.muli %arg13, %c1_i32_12 : i32
      %c0_i32_13 = arith.constant 0 : i32
      %13 = arith.addi %c0_i32_13, %12 : i32
      %c0_i32_14 = arith.constant 0 : i32
      %14 = arith.cmpi eq, %arg1, %c0_i32_14 : i32
      %15 = arith.extui %14 : i1 to i32
      %c0_i32_15 = arith.constant 0 : i32
      %16 = arith.cmpi ne, %15, %c0_i32_15 : i32
      scf.if %16 {
        %c0_34 = arith.constant 0 : index
        %c0_35 = arith.constant 0 : index
        %c0_36 = arith.constant 0 : index
        %49 = vector.load %arg2[%c0_34, %c0_35, %c0_36] : memref<1x8x32xbf16, #tpu.memory_space<vmem>>, vector<1x8x32xbf16>
        %50 = vector.shape_cast %49 : vector<1x8x32xbf16> to vector<8x32xbf16>
        %51 = arith.index_cast %13 : i32 to index
        %c0_37 = arith.constant 0 : index
        %c0_38 = arith.constant 0 : index
        %52 = vector.load %arg5[%51, %c0_37, %c0_38] : memref<4x32x8xbf16, #tpu.memory_space<vmem>>, vector<1x32x8xbf16>
        %53 = vector.shape_cast %52 : vector<1x32x8xbf16> to vector<32x8xbf16>
        %cst_39 = arith.constant dense<0.000000e+00> : vector<8x8xf32>
        %54 = tpu.matmul %50, %53, %cst_39 {dimension_numbers = #tpu.dot_dimension_numbers<[1], [0], [0], [1], [0, 0, 1, 1], [], []>} : vector<8x32xbf16>, vector<32x8xbf16>, vector<8x8xf32> -> vector<8x8xf32>
        %55 = arith.truncf %54 : vector<8x8xf32> to vector<8x8xbf16>
        %56 = arith.index_cast %13 : i32 to index
        %c0_40 = arith.constant 0 : index
        %c0_41 = arith.constant 0 : index
        %57 = vector.load %arg10[%56, %c0_40, %c0_41] : memref<4x8x8xbf16, #tpu.memory_space<vmem>>, vector<1x8x8xbf16>
        %58 = vector.shape_cast %57 : vector<1x8x8xbf16> to vector<8x8xbf16>
        %59 = vector.shape_cast %55 : vector<8x8xbf16> to vector<1x8x8xbf16>
        tpu.vector_store %arg10[%56, %c0_40, %c0_41], %59 {strides = array<i32>} : memref<4x8x8xbf16, #tpu.memory_space<vmem>>, vector<1x8x8xbf16>,
        %60 = arith.index_cast %13 : i32 to index
        %c0_42 = arith.constant 0 : index
        %c0_43 = arith.constant 0 : index
        %61 = vector.load %arg6[%60, %c0_42, %c0_43] : memref<4x32x8xbf16, #tpu.memory_space<vmem>>, vector<1x32x8xbf16>
        %62 = vector.shape_cast %61 : vector<1x32x8xbf16> to vector<32x8xbf16>
        %cst_44 = arith.constant dense<0.000000e+00> : vector<8x8xf32>
        %63 = tpu.matmul %50, %62, %cst_44 {dimension_numbers = #tpu.dot_dimension_numbers<[1], [0], [0], [1], [0, 0, 1, 1], [], []>} : vector<8x32xbf16>, vector<32x8xbf16>, vector<8x8xf32> -> vector<8x8xf32>
        %64 = arith.truncf %63 : vector<8x8xf32> to vector<8x8xbf16>
        %65 = arith.index_cast %13 : i32 to index
        %c0_45 = arith.constant 0 : index
        %c0_46 = arith.constant 0 : index
        %66 = vector.load %arg11[%65, %c0_45, %c0_46] : memref<4x8x8xbf16, #tpu.memory_space<vmem>>, vector<1x8x8xbf16>
        %67 = vector.shape_cast %66 : vector<1x8x8xbf16> to vector<8x8xbf16>
        %68 = vector.shape_cast %64 : vector<8x8xbf16> to vector<1x8x8xbf16>
        tpu.vector_store %arg11[%65, %c0_45, %c0_46], %68 {strides = array<i32>} : memref<4x8x8xbf16, #tpu.memory_space<vmem>>, vector<1x8x8xbf16>,
      } else {
      }
      %17 = arith.index_cast %13 : i32 to index
      %c0_16 = arith.constant 0 : index
      %c0_17 = arith.constant 0 : index
      %18 = vector.load %arg4[%17, %c0_16, %c0_17] : memref<4x32x8xbf16, #tpu.memory_space<vmem>>, vector<1x32x8xbf16>
      %19 = vector.shape_cast %18 : vector<1x32x8xbf16> to vector<32x8xbf16>
      %cst_18 = arith.constant dense<0.000000e+00> : vector<8x8xf32>
      %20 = tpu.matmul %3, %19, %cst_18 {dimension_numbers = #tpu.dot_dimension_numbers<[1], [0], [0], [1], [0, 0, 1, 1], [], []>} : vector<8x32xbf16>, vector<32x8xbf16>, vector<8x8xf32> -> vector<8x8xf32>
      %21 = arith.truncf %20 : vector<8x8xf32> to vector<8x8xbf16>
      %22 = arith.index_cast %13 : i32 to index
      %c0_19 = arith.constant 0 : index
      %c0_20 = arith.constant 0 : index
      %23 = vector.load %arg10[%22, %c0_19, %c0_20] : memref<4x8x8xbf16, #tpu.memory_space<vmem>>, vector<1x8x8xbf16>
      %24 = vector.shape_cast %23 : vector<1x8x8xbf16> to vector<8x8xbf16>
      %25 = arith.index_cast %13 : i32 to index
      %c0_21 = arith.constant 0 : index
      %c0_22 = arith.constant 0 : index
      %26 = vector.load %arg11[%25, %c0_21, %c0_22] : memref<4x8x8xbf16, #tpu.memory_space<vmem>>, vector<1x8x8xbf16>
      %27 = vector.shape_cast %26 : vector<1x8x8xbf16> to vector<8x8xbf16>
      %cst_23 = arith.constant dense<0.000000e+00> : vector<8x8xf32>
      %28 = tpu.matmul %21, %24, %cst_23 {dimension_numbers = #tpu.dot_dimension_numbers<[1], [1], [0], [0], [0, 0, 1, 0], [], []>} : vector<8x8xbf16>, vector<8x8xbf16>, vector<8x8xf32> -> vector<8x8xf32>
      %cst_24 = arith.constant dense<0xFF800000> : vector<8xf32>
      %29 = vector.multi_reduction <maximumf>, %28, %cst_24 [1] : vector<8x8xf32> to vector<8xf32>
      %30 = vector.shape_cast %29 : vector<8xf32> to vector<8x1xf32>
      %31 = vector.broadcast %30 : vector<8x1xf32> to vector<8x8xf32>
      %32 = arith.subf %28, %31 : vector<8x8xf32>
      %33 = math.exp %32 : vector<8x8xf32>
      %cst_25 = arith.constant dense<0.000000e+00> : vector<8xf32>
      %34 = vector.multi_reduction <add>, %33, %cst_25 [1] : vector<8x8xf32> to vector<8xf32>
      %35 = vector.shape_cast %34 : vector<8xf32> to vector<8x1xf32>
      %36 = arith.truncf %33 : vector<8x8xf32> to vector<8x8xbf16>
      %cst_26 = arith.constant dense<0.000000e+00> : vector<8x8xf32>
      %37 = tpu.matmul %36, %27, %cst_26 {dimension_numbers = #tpu.dot_dimension_numbers<[1], [0], [0], [1], [0, 0, 1, 1], [], []>} : vector<8x8xbf16>, vector<8x8xbf16>, vector<8x8xf32> -> vector<8x8xf32>
      %38 = tpu.reciprocal %35 {approx = true} : vector<8x1xf32> -> vector<8x1xf32>
      %39 = vector.broadcast %38 : vector<8x1xf32> to vector<8x8xf32>
      %40 = arith.mulf %37, %39 : vector<8x8xf32>
      %41 = arith.truncf %40 : vector<8x8xf32> to vector<8x8xbf16>
      %c0_27 = arith.constant 0 : index
      %c0_28 = arith.constant 0 : index
      %42 = vector.load %arg12[%c0_27, %c0_28] : memref<8x32xf32, #tpu.memory_space<vmem>>, vector<8x32xf32>
      %43 = arith.index_cast %13 : i32 to index
      %c0_29 = arith.constant 0 : index
      %c0_30 = arith.constant 0 : index
      %44 = vector.load %arg7[%43, %c0_29, %c0_30] : memref<4x8x32xbf16, #tpu.memory_space<vmem>>, vector<1x8x32xbf16>
      %45 = vector.shape_cast %44 : vector<1x8x32xbf16> to vector<8x32xbf16>
      %cst_31 = arith.constant dense<0.000000e+00> : vector<8x32xf32>
      %46 = tpu.matmul %41, %45, %cst_31 {dimension_numbers = #tpu.dot_dimension_numbers<[1], [0], [0], [1], [0, 0, 1, 1], [], []>} : vector<8x8xbf16>, vector<8x32xbf16>, vector<8x32xf32> -> vector<8x32xf32>
      %47 = arith.addf %42, %46 : vector<8x32xf32>
      %c0_32 = arith.constant 0 : index
      %c0_33 = arith.constant 0 : index
      %48 = vector.load %arg12[%c0_32, %c0_33] : memref<8x32xf32, #tpu.memory_space<vmem>>, vector<8x32xf32>
      tpu.vector_store %arg12[%c0_32, %c0_33], %47 {strides = array<i32>} : memref<8x32xf32, #tpu.memory_space<vmem>>, vector<8x32xf32>,
    }
    %c4_i32_4 = arith.constant 4 : i32
    %c0_5 = arith.constant 0 : index
    %c0_6 = arith.constant 0 : index
    %5 = vector.load %arg12[%c0_5, %c0_6] : memref<8x32xf32, #tpu.memory_space<vmem>>, vector<8x32xf32>
    %c0_7 = arith.constant 0 : index
    %c0_8 = arith.constant 0 : index
    %6 = vector.load %arg8[%c0_7, %c0_8] : memref<1x32xf32, #tpu.memory_space<vmem>>, vector<1x32xf32>
    %7 = vector.broadcast %6 : vector<1x32xf32> to vector<8x32xf32>
    %8 = arith.addf %5, %7 : vector<8x32xf32>
    %c0_9 = arith.constant 0 : index
    %c0_10 = arith.constant 0 : index
    %c0_11 = arith.constant 0 : index
    %9 = vector.load %arg9[%c0_9, %c0_10, %c0_11] : memref<1x8x32xf32, #tpu.memory_space<vmem>>, vector<1x8x32xf32>
    %10 = vector.shape_cast %9 : vector<1x8x32xf32> to vector<8x32xf32>
    %11 = vector.shape_cast %8 : vector<8x32xf32> to vector<1x8x32xf32>
    tpu.vector_store %arg9[%c0_9, %c0_10, %c0_11], %11 {strides = array<i32>} : memref<1x8x32xf32, #tpu.memory_space<vmem>>, vector<1x8x32xf32>,
    return
  }
  func.func @transform_0(%arg0: i32, %arg1: i32) -> (i32, i32, i32) {
    %c0_i32 = arith.constant 0 : i32
    %c0_i32_0 = arith.constant 0 : i32
    %c0_i32_1 = arith.constant 0 : i32
    return %arg0, %c0_i32, %c0_i32_0 : i32, i32, i32
  }
  func.func @transform_1(%arg0: i32, %arg1: i32) -> (i32, i32, i32) {
    %c0_i32 = arith.constant 0 : i32
    %c0_i32_0 = arith.constant 0 : i32
    return %arg0, %arg1, %c0_i32 : i32, i32, i32
  }
  func.func @transform_2(%arg0: i32, %arg1: i32) -> (i32, i32, i32) {
    %c0_i32 = arith.constant 0 : i32
    %c0_i32_0 = arith.constant 0 : i32
    %c0_i32_1 = arith.constant 0 : i32
    %c0_i32_2 = arith.constant 0 : i32
    return %c0_i32, %c0_i32_0, %c0_i32_1 : i32, i32, i32
  }
  func.func @transform_3(%arg0: i32, %arg1: i32) -> (i32, i32, i32) {
    %c0_i32 = arith.constant 0 : i32
    %c0_i32_0 = arith.constant 0 : i32
    %c0_i32_1 = arith.constant 0 : i32
    %c0_i32_2 = arith.constant 0 : i32
    return %c0_i32, %c0_i32_0, %c0_i32_1 : i32, i32, i32
  }
  func.func @transform_4(%arg0: i32, %arg1: i32) -> (i32, i32, i32) {
    %c0_i32 = arith.constant 0 : i32
    %c0_i32_0 = arith.constant 0 : i32
    %c0_i32_1 = arith.constant 0 : i32
    %c0_i32_2 = arith.constant 0 : i32
    return %c0_i32, %c0_i32_0, %c0_i32_1 : i32, i32, i32
  }
  func.func @transform_5(%arg0: i32, %arg1: i32) -> (i32, i32, i32) {
    %c0_i32 = arith.constant 0 : i32
    %c0_i32_0 = arith.constant 0 : i32
    %c0_i32_1 = arith.constant 0 : i32
    %c0_i32_2 = arith.constant 0 : i32
    return %c0_i32, %c0_i32_0, %c0_i32_1 : i32, i32, i32
  }
  func.func @transform_6(%arg0: i32, %arg1: i32) -> (i32, i32) {
    %c0_i32 = arith.constant 0 : i32
    %c0_i32_0 = arith.constant 0 : i32
    %c0_i32_1 = arith.constant 0 : i32
    return %c0_i32, %c0_i32_0 : i32, i32
  }
  func.func @transform_7(%arg0: i32, %arg1: i32) -> (i32, i32, i32) {
    %c0_i32 = arith.constant 0 : i32
    %c0_i32_0 = arith.constant 0 : i32
    return %arg0, %arg1, %c0_i32 : i32, i32, i32
  }
}

</mosaic_0001>

<bundles_post_ra>
// kernel: tpu_custom_call.1
= control target key start
LH: loop header
LB: loop body
LE: loop exit
PB: predicated region body
PF: predicated region fallthrough
CT: control target
= control target key end

     0   :  { %12 = vsyncpa [#allocation6], 0  ;;  %s1074_s0 = inlined_call_operand.vmem [shape: bf16[2,8,32], index: 0, kind: input, shape index: {}]   ;;  %s1075_s1 = inlined_call_operand.vmem [shape: bf16[2,8,32], index: 1, kind: input, shape index: {}]   ;;  %s1076_s2 = inlined_call_operand.vmem [shape: bf16[4,32,8], index: 2, kind: input, shape index: {}]   ;;  %s1077_s3 = inlined_call_operand.vmem [shape: bf16[4,32,8], index: 3, kind: input, shape index: {}]   ;;  %s1078_s4 = inlined_call_operand.vmem [shape: bf16[4,32,8], index: 4, kind: input, shape index: {}]   ;;  %s1079_s5 = inlined_call_operand.vmem [shape: bf16[4,8,32], index: 5, kind: input, shape index: {}]   ;;  %s1080_s6 = inlined_call_operand.vmem [shape: f32[1,32], index: 6, kind: input, shape index: {}]   ;;  %s1081_s7 = inlined_call_operand.hbm [shape: f32[2,8,32], index: 7, kind: output, shape index: {}]  }
   0x1   :  { %14 = vsyncpa [#allocation6 + $0x1], 0  ;;  %s913_s24 = smov 0   ;;  %s915_s25 = smov 0  }
   0x2   :  { %s917_s26 = smov 0   ;;  %s919_s27 = smov 0  }
   0x3   :  { %s921_s28 = smov 0   ;;  %s923_s29 = smov 0  }
   0x4 LB: > { %s654_s30 = sadd.s32 4294967295, %s866_s29   ;;  %s655_s8 = sadd.s32 4294967294, %s866_s29   ;;  %s866_s29 = sphi %s923_s29, %s20_s29   ;;  %s862_s28 = sphi %s921_s28, %s1090_s28   ;;  %s858_s27 = sphi %s919_s27, %s1089_s27   ;;  %s854_s26 = sphi %s917_s26, %s1088_s26   ;;  %s850_s25 = sphi %s915_s25, %s1087_s25   ;;  %s846_s24 = sphi %s913_s24, %s1086_s24  }
   0x5   : > { %s32_s9 = sadd.s32 1, %s862_s28  ;;  %s200_s10 = sadd.s32 1, %s854_s26 }
   0x6   : > { %p34_p0 = scmp.ge.s32.totalorder %s32_s9, 2  ;;  %p210_p1 = scmp.ne.s32.totalorder %s854_s26, %s850_s25 }
   0x7   : > { %p211_p2 = scmp.eq.s32.totalorder %s654_s30, 1  ;;  %p216_p3 = scmp.ne.s32.totalorder %s850_s25, %s846_s24 }
   0x8   : > { %s1092_s9 = smov (%p34_p0, %s32_s9), 0  ;;  %p217_p5 = scmp.eq.s32.totalorder %s655_s8, 1 }
   0x9   : > { %p953_p4 = por %p211_p2, %p210_p1  ;;  %s195_s12 = ssub.s32 %s862_s28, %s1092_s9 }
   0xa   : > { %p658_p6 = scmp.ge.s32.totalorder %s866_s29, 1  ;;  %p198_p7 = scmp.eq.s32.totalorder %s195_s12, 0 }
   0xb   : > { %p960_p8 = por %p217_p5, %p216_p3  ;;  %p267_p9 = scmp.lt.s32.totalorder %s866_s29, 3 }
   0xc   : > { %s966_s14 = scalar_select %p198_p7, %s854_s26, %s200_s10  }
   0xd   : > { %p268_p10 = pnand %p658_p6, %p267_p9 }
   0xe   : > { %s1082_s15 = sand.u32 (!%p268_p10), 1, %s850_s25   ;;  %p305_p11 = scmp.lt.s32.totalorder (!%p268_p10), %s858_s27, 1 }
   0xf   : > { %271 = sbr.rel (%p268_p10) target bundleno = 712 (0x2c8), region = 48  ;;  %s972_s16 = sshll.u32 (!%p268_p10), %s1082_s15, 3 }
  0x10   : > { %s304_s8 = scalar_lea.vmem (!%p268_p10), [#allocation5], %s972_s16  ;;  %s987_s10 = smov (!%p268_p10), 0  }
  0x14   : > { %vm317_vm0 = vcmask 261120   ;;  %v872_v0 = vmov 0.0   ;;  %s306_s17 = scalar_select %p305_p11, %s858_s27, 1 }
  0x15   : > { %318 = vst.msk [vmem:[#allocation4] sm:$0xff] %vm317_vm0, %v872_v0 }
  0x16   : > { %s660_s18 = sshll.u32 %s306_s17, 2 }
  0x17   : > { %s979_s21 = scalar_lea.vmem %s1074_s0, %s660_s18  ;;  %s315_s30 = scalar_lea.vmem %s1075_s1, %s660_s18 }
  0x18   : > { %v984_v1 = vld [vmem:[%s315_s30] sm:$0xf] }
  0x19 LB: >> { %s706_s12 = sshll.u32 %s870_s10, 4  ;;  %v330_v6 = vld [vmem:[%s979_s21] sm:$0xf]  ;;  %s1008_s17 = sshll.u32 %s870_s10, 2  ;;  %vm369_vm1 = vcmask 60416   ;;  %vm448_vm2 = vcmask 64512   ;;  %s870_s10 = sphi %s987_s10, %s325_s10  }
  0x1a   : >> { %s333_s20 = scalar_lea.vmem %s1077_s3, %s706_s12  ;;  %s408_s18 = scalar_lea.vmem %s1076_s2, %s706_s12  ;;  %vm481_vm3 = vcmask 1043456  }
  0x1b   : >> { %v708_v2 = vld [vmem:[%s333_s20 + $0x8] sm:$0xff]  ;;  %v707_v4 = vld [vmem:[%s333_s20] sm:$0xff]  ;;  %s372_s15 = scalar_lea.vmem %s1078_s4, %s706_s12  ;;  %s368_s19 = scalar_lea.vmem [#allocation2], %s1008_s17 }
  0x1c   : >> { %v714_v3 = vld [vmem:[%s408_s18 + $0x8] sm:$0xff]  ;;  %359 = vmatpush.bf16.msra.mxu0 %v708_v2  ;;  %v713_v5 = vld [vmem:[%s408_s18] sm:$0xff]  ;;  %s404_s12 = scalar_lea.vmem [#allocation3], %s1008_s17  ;;  %s503_s18 = scalar_lea.vmem %s1079_s5, %s1008_s17 }
  0x1d   : >> { %434 = vmatpush.bf16.msra.mxu2 %v714_v3  ;;  %v711_v7 = vld [vmem:[%s372_s15 + $0x8] sm:$0xff]  ;;  %v710_v8 = vld [vmem:[%s372_s15] sm:$0xff]  ;;  %s325_s10 = sadd.s32 1, %s870_s10  }
  0x1e   : >> { %395 = vmatpush.bf16.msra.mxu1 %v711_v7  ;;  %v504_v25 = vld [vmem:[%s503_s18] sm:$0xf]  ;;  %p322_p12 = scmp.ge.s32.totalorder %s325_s10, 4  }
  0x1f   : >> { %v509_v26 = vsel %vm481_vm3, %v504_v25, 0  ;;  %v501_v39 = vld [vmem:[#allocation4] sm:$0xff]  ;;  %s703_s15 = sshll.u32 (%p322_p12), %s858_s27, 3  ;;  %s547_s17 = sshll.u32 (%p322_p12), %s304_s8, 4  ;;  %s548_s17 = int_to_ptr.vmem [resolvable:$true] %s547_s17 }
  0x20   : >> { %360 = vmatpush.bf16.msra.mxu0 %v707_v4  ;;  %v783_v44 = vld [vmem:[%s1080_s6] ss:$0 sm:$0xff] (%p322_p12)  ;;  %s545_s20 = scalar_lea.hbm (%p322_p12), %s1081_s7, %s703_s15  ;;  %s1085_s21 = sand.u32 (%p322_p12), 1, %s850_s25  }
  0x21   : >> { %435 = vmatpush.bf16.msra.mxu2 %v713_v5  ;;  %s549_s10 = sshll.u32 (%p322_p12), %s545_s20, 4  ;;  %s534_s22 = scalar_lea.sflag (%p322_p12), [#allocation6], %s1085_s21  ;;  %s550_s10 = int_to_ptr.hbm [resolvable:$true] %s549_s10 }
  0x22   : >> { %396 = vmatpush.bf16.msra.mxu1 %v710_v8  ;;  %s798_s18 = sshra.s32 (%p322_p12), %s550_s10, 4  ;;  %s799_s18 = int_to_ptr.hbm [resolvable:$true] %s798_s18 }
  0x23   : >> { %672 = vmatmul.msk.bf16.vlgmr.msra.gmra.mxu0 %vm317_vm0, %v330_v6  ;;  %s800_s23 = scalar_lea.hbm (%p322_p12), %s799_s18, 8  ;;  %p805_p2 = scmp.lt.s32.totalorder (%p322_p12), %s799_s18, %s1081_s7 }
  0x24   : >> { %695 = vmatmul.msk.bf16.vlgmr.msra.gmra.mxu2 %vm317_vm0, %v984_v1  ;;  %p801_p13 = scmp.ne.s32.totalorder (%p322_p12), %s799_s18, %s800_s23 }
  0x25   : >> { %683 = vmatmul.msk.bf16.vlgmr.msra.gmra.mxu1 %vm317_vm0, %v330_v6 }
  0x26   : >> { %518 = vmatpush.bf16.msrb.mxu1 %v509_v26  ;;  %p802_p0 = pnand (%p322_p12), %p801_p13, %p953_p4 }
  0x28   : > { %p803_p1 = pneg (%p322_p12), %p802_p0 }
  0xa0   : >> { %v362_v9 = vpop.f32.mrf.mxu0 }
  0xa1   : >> { %v366_v10 = vpack.c.bf16 %v362_v9, %v362_v9 }
  0xa2   : >> { %v398_v17 = vpop.f32.mrf.mxu1 }
  0xa3   : >> { %370 = vst.msk [vmem:[%s368_s19] sm:$0xf] %vm369_vm1, %v366_v10  ;;  %v402_v18 = vpack.c.bf16 %v398_v17, %v398_v17 }
  0xa5   : >> { %405 = vst.msk [vmem:[%s404_s12] sm:$0xf] %vm369_vm1, %v402_v18 }
  0xa7   : >> { %v437_v11 = vpop.f32.mrf.mxu2 }
  0xa8   : >> { %v364_v12 = vpop.f32.mrf.mxu0  ;;  %v441_v16 = vpack.c.bf16 %v437_v11, %v437_v11 }
  0xaa   : >> { %v444_v13 = vld [vmem:[%s368_s19] sm:$0xf]  ;;  %v400_v19 = vpop.f32.mrf.mxu1  ;;  %s804_s19 = scalar_lea.hbm (%p322_p12), %s1081_s7, 16 }
  0xab   : >> { %v453_v14 = vsel %vm448_vm2, %v444_v13, 0  ;;  %p806_p3 = scmp.lt.s32.totalorder (%p322_p12), %s804_s19, %s800_s23 }
  0xac   : >> { %462 = vmatpush.bf16.xpose.msra.mxu3 %v453_v14  ;;  %v447_v20 = vld [vmem:[%s404_s12] sm:$0xf] }
  0xad   : >> { %v483_v21 = vsel %vm481_vm3, %v447_v20, 0  ;;  %p807_p5 = por (%p322_p12), %p806_p3, %p805_p2 }
  0xae   : >> { %492 = vmatpush.bf16.msrb.mxu0 %v483_v21 }
  0xaf   : >> { %v439_v15 = vpop.f32.mrf.mxu2  ;;  %p808_p6 = pnand (%p322_p12), %p807_p5, %p803_p1 }
  0xb3   : >> { %698 = vmatmul.msk.bf16.vlgmr.msra.gmra.mxu3 %vm448_vm2, %v441_v16 }
 0x136   : >> { %v464_v22 = vpop.f32.mrf.mxu3 }
 0x137   : >> { %v468_v23 = vsel %vm448_vm2, %v464_v22, -inf }
 0x138   : >> { %469 = vmax.xlane.f32.xlu0 %v468_v23 }
 0x13e   : >> { %v466_v24 = vpop.f32.mrf.mxu3 }
 0x1ab   : >> { %v470_v27 = vpop.xlane.xlu0 %469 }
 0x1ac   : >> { %v471_v28 = vsub.f32 %v464_v22, %v470_v27 }
 0x1ae   : >> { %v472_v29 = vmul.f32 1.442695, %v471_v28 }
 0x1b0   : >> { %779 = vpow2.f32 %v472_v29 }
 0x1b6   : >> { %v780_v30 = vpop.eup %779 }
 0x1b7   : >> { %v474_v31 = vsel %vm448_vm2, %v780_v30, 0.0  ;;  %v477_v32 = vpack.c.bf16 %v780_v30, %v780_v30 }
 0x1b8   : >> { %475 = vadd.xlane.f32.xlu0 %v474_v31 }
 0x1b9   : >> { %699 = vmatmul.msk.bf16.vlgmr.msrb.gmra.mxu0 %vm448_vm2, %v477_v32 }
 0x22b   : >> { %v476_v33 = vpop.xlane.xlu0 %475 }
 0x22c   : >> { %781 = vrcp.f32 %v476_v33 }
 0x232   : >> { %v782_v34 = vpop.eup %781 }
 0x236   : >> { %v494_v35 = vpop.f32.mrf.mxu0 }
 0x237   : >> { %v499_v36 = vmul.f32 %v782_v34, %v494_v35 }
 0x239   : >> { %v500_v37 = vpack.c.bf16 %v499_v36, %v499_v36 }
 0x23b   : >> { %701 = vmatmul.msk.bf16.vlgmr.msrb.gmra.mxu1 %vm448_vm2, %v500_v37 }
 0x23e   : >> { %v496_v38 = vpop.f32.mrf.mxu0 }
 0x2b8   : >> { %v520_v40 = vpop.f32.mrf.mxu1 }
 0x2b9   : >> { %v524_v41 = vadd.f32 %v520_v40, %v501_v39 }
 0x2bb   : >> { %525 = vst.msk [vmem:[#allocation4] sm:$0xff] %vm317_vm0, %v524_v41 }
 0x2bc   : > { %324 = sbr.rel (!%p322_p12) target bundleno = 25 (0x19), region = 105 }
 0x2c0   : >> { %v522_v42 = vpop.f32.mrf.mxu1 }
 0x2c2   : > { %v526_v43 = vld [vmem:[#allocation4] sm:$0xff] }
 0x2c3   : > { %v531_v45 = vadd.f32 %v783_v44, %v526_v43 }
 0x2c5   : > { %532 = vst.msk [vmem:[%s304_s8] sm:$0xff] %vm317_vm0, %v531_v45 }
 0x2c6   : > { %811 = shalt.err (!%p808_p6)
}
 0x2c7   : > { %715 = dma.vmem_to_hbm [thread:$0]  (%p953_p4), %s548_s17, 128, %s550_s10, %s534_s22  }
 0x2c8 PF: > { %p721_p7 = scmp.ge.s32.totalorder %s866_s29, 2  ;;  %s561_s16 = sand.u32 1, %s846_s24  }
 0x2c9   : > { %s562_s8 = scalar_lea.sflag [#allocation6], %s561_s16 }
 0x2ca   : > { %p718_p9 = pnand %p721_p7, %p960_p8 }
 0x2cc   : > { %p719_p10 = pneg %p718_p9 }
 0x2ce   : > { %841 = dma.done.wait (%p719_p10), %s562_s8, 128  }
 0x2cf   : > { %843 = vsyncadd (%p719_p10), %s562_s8, 4294967168  ;;  %s20_s29 = sadd.s32 1, %s866_s29   ;;  %s1086_s24 = smov %s850_s25 }
 0x2d0   : > { %p17_p11 = scmp.ge.s32.totalorder %s20_s29, 4   ;;  %s1087_s25 = smov %s854_s26 }
 0x2d1   : > { %s1088_s26 = smov %s966_s14  ;;  %s1089_s27 = smov %s862_s28 }
 0x2d2   : > { %s1090_s28 = smov %s1092_s9  ;;  %19 = sbr.rel (!%p17_p11) target bundleno = 4 (0x4), region = 116 }
 0x2d7   :  { %568 = vsyncpa [#allocation6], 1 }
 0x2d8   :  { %570 = vsyncpa [#allocation6 + $0x1], 1 }

</bundles_post_ra>
